<compile_context>
chip_gen: v6e
topology: v6e:2x2x1
jax: 0.10.0
libtpu: 0.0.40
codegen_flags: <defaults>
</compile_context>

<pallas_src>
import jax
import jax.numpy as jnp
from jax.experimental import pallas as pl
from jax.experimental.pallas import tpu as pltpu


# ---------------------------------------------------------------------------
# Kernel: one fused MXU dot per N-tile (offset already folded into C).
# ---------------------------------------------------------------------------
def _bfm_kernel(c_ref, slab_ref, out_ref):
    # c_ref    : (3B, Kp)   resident tiny LHS (R, alpha, offset folded in)
    # slab_ref : (Kp, TN)   streamed basis slab, lane-dense in N
    # out_ref  : (3B, TN)
    out_ref[...] = jnp.dot(
        c_ref[...], slab_ref[...],
        preferred_element_type=jnp.float32).astype(out_ref.dtype)


# ---------------------------------------------------------------------------
# One-time parameter packing (model-load time, NOT per forward call).
# ---------------------------------------------------------------------------
def pack_basis(u, w, dtype=jnp.bfloat16):
    """u: (3, N), w: (3, N, K)  ->  slab (3K+4, N).

    Rows 0..3K-1 : w transposed to axis-major/basis-minor ((3,K,N) flattened)
    Rows 3K..3K+2: u
    Row  3K+3    : ones (lets the wrapper fold `offset` into C)
    No sublane zero-padding: the Kp block dim equals the full array dim, which
    Pallas allows, so we do not stream wasted pad rows from HBM.
    """
    three, N, K = w.shape
    assert three == 3 and u.shape == (3, N)
    w_rows = jnp.transpose(w, (0, 2, 1)).reshape(3 * K, N)            # (3K, N)
    ones = jnp.ones((1, N), jnp.float32)
    slab = jnp.concatenate([w_rows, u.astype(jnp.float32), ones], 0)  # (3K+4, N)
    return slab.astype(dtype)


# ---------------------------------------------------------------------------
# Forward wrapper (jit this; the tiny C-construction glue then fuses with the
# pallas_call instead of being 4-5 separate un-fused XLA ops).
# ---------------------------------------------------------------------------
def bfm_forward(R, offset, alpha_shp, alpha_exp, slab, *,
                tile_n=8192, slab_buffers=2):
    """pts3d = R @ (u + w @ alpha) + offset, using the pre-packed slab.

    Unbatched: R (3,3), offset (3,1), alpha_* (k,1)        -> (3, N)
    Batched  : R (B,3,3), offset (B,3,1), alpha_* (B,k,1)  -> (B, 3, N)
               (one kernel; slab stream amortized across all B poses)
    """
    squeeze = (R.ndim == 2)
    if squeeze:
        R, offset = R[None], offset[None]
        alpha_shp, alpha_exp = alpha_shp[None], alpha_exp[None]

    B = R.shape[0]
    Kp, N = slab.shape
    K = alpha_shp.shape[1] + alpha_exp.shape[1]
    assert Kp == 3 * K + 4, "slab must come from pack_basis with matching K"
    M = 3 * B

    # Tiny per-call glue (O(B*K) work): fold R, alpha AND offset into C.
    alpha = jnp.concatenate([alpha_shp, alpha_exp], axis=1).reshape(B, K)    # (B, K)
    c_w = (R[:, :, :, None] * alpha[:, None, None, :]).reshape(B, 3, 3 * K)  # (B,3,3K)
    C = jnp.concatenate([c_w, R, offset], axis=2)                            # (B,3,Kp)
    C = C.reshape(M, Kp).astype(slab.dtype)

    # Lane-dimension tiling; partial last tile handled by Pallas masking.
    tn = min(tile_n, N)
    grid = (pl.cdiv(N, tn),)

    # Explicit VMEM budget: buffered slab tiles + double-buffered output tiles
    # + resident C, with 2x headroom.  Clamped to [32, 64] MiB so the same code
    # is safe on v7x (64 MiB physical VMEM) and v5e/v6e (128 MiB).
    itemsize = jnp.dtype(slab.dtype).itemsize
    need = (slab_buffers * Kp * tn * itemsize          # streamed slab buffers
            + 2 * M * tn * 4                           # output buffers
            + M * Kp * itemsize)                       # resident C
    vmem_limit = int(min(64 << 20, max(32 << 20, 2 * need)))

    slab_spec_kwargs = {}
    if slab_buffers != 2:
        # e.g. Buffered(3) can help on v7x where per-tile DMA is very short.
        slab_spec_kwargs["pipeline_mode"] = pl.Buffered(slab_buffers)

    grid_spec = pl.GridSpec(
        grid=grid,
        in_specs=[
            pl.BlockSpec((M, Kp), lambda i: (0, 0)),                       # C (resident)
            pl.BlockSpec((Kp, tn), lambda i: (0, i), **slab_spec_kwargs),  # slab (streamed)
        ],
        out_specs=pl.BlockSpec((M, tn), lambda i: (0, i)),
    )

    cost = pl.CostEstimate(
        flops=2 * M * Kp * N,
        transcendentals=0,
        bytes_accessed=M * Kp * itemsize + Kp * N * itemsize + M * N * 4,
    )

    out = pl.pallas_call(
        _bfm_kernel,
        out_shape=jax.ShapeDtypeStruct((M, N), jnp.float32),
        grid_spec=grid_spec,
        compiler_params=pltpu.CompilerParams(
            dimension_semantics=("parallel",),
            vmem_limit_bytes=vmem_limit),
        cost_estimate=cost,
    )(C, slab)

    out = out.reshape(B, 3, N)
    return out[0] if squeeze else out


# ---------------------------------------------------------------------------
# Synthetic parameters built exactly like the module's __init__.
# ---------------------------------------------------------------------------
def make_params(key, n_vertices, shape_dim, exp_dim):
    k_u, k_s, k_e = jax.random.split(key, 3)
    K = shape_dim + exp_dim
    u_raw = jax.random.normal(k_u, (n_vertices * 3,), jnp.float32)
    w_shp = jax.random.normal(k_s, (n_vertices * 3, shape_dim), jnp.float32) * 0.1
    w_exp = jax.random.normal(k_e, (n_vertices * 3, exp_dim), jnp.float32) * 0.1

    # u.view(-1, 3).transpose(1, 0) -> (3, N)
    u = u_raw.reshape(-1, 3).T
    # cat(w_shp, w_exp, dim=1).view(-1, 3, K).permute(1, 0, 2) -> (3, N, K)
    w = jnp.concatenate([w_shp, w_exp], axis=1).reshape(-1, 3, K).transpose(1, 0, 2)
    return u, w


def reference_forward(R, offset, alpha_shp, alpha_exp, u, w):
    alpha = jnp.concatenate([alpha_shp, alpha_exp], axis=0)          # (K, 1)
    base = jnp.squeeze(jnp.matmul(w, alpha), axis=-1)                # (3, N)
    return R @ (u + base) + offset


if __name__ == "__main__":
    N_VERT = 256       # small synthetic vertex count (real BFM uses ~38k)
    SHAPE_DIM = 40
    EXP_DIM = 10

    root = jax.random.PRNGKey(0)
    k_param, k_R, k_off, k_as, k_ae = jax.random.split(root, 5)

    u, w = make_params(k_param, N_VERT, SHAPE_DIM, EXP_DIM)

    R = jax.random.normal(k_R, (3, 3), jnp.float32)
    offset = jax.random.normal(k_off, (3, 1), jnp.float32)
    alpha_shp = jax.random.normal(k_as, (SHAPE_DIM, 1), jnp.float32)
    alpha_exp = jax.random.normal(k_ae, (EXP_DIM, 1), jnp.float32)

    ref = reference_forward(R, offset, alpha_shp, alpha_exp, u, w)
    fwd = jax.jit(bfm_forward, static_argnames=("tile_n", "slab_buffers"))

    # 1) f32 slab: tight correctness check of packing + kernel.
    #    tile_n=128 exercises the multi-tile (grid=(2,)) pipelined path at demo
    #    size; real BFM (N ~ 38k) would use the default tile_n=8192.
    slab_f32 = pack_basis(u, w, dtype=jnp.float32)
    pts_f32 = jax.block_until_ready(
        fwd(R, offset, alpha_shp, alpha_exp, slab_f32, tile_n=128))
    assert pts_f32.shape == (3, N_VERT)
    assert jnp.allclose(pts_f32, ref, atol=1e-4, rtol=1e-4), "f32 mismatch vs reference"

    # 2) bf16 slab (default / recommended: halves HBM traffic in a purely
    #    bandwidth-bound kernel): loose check vs the f32 reference.
    slab_bf16 = pack_basis(u, w)  # bf16
    pts_bf16 = jax.block_until_ready(
        fwd(R, offset, alpha_shp, alpha_exp, slab_bf16, tile_n=128))
    assert pts_bf16.shape == (3, N_VERT)
    assert jnp.allclose(pts_bf16, ref, atol=2e-1, rtol=5e-2), "bf16 mismatch vs reference"

    # 3) Batched poses (B=2): the slab stream is amortized across poses in one kernel.
    B = 2
    kb = jax.random.split(jax.random.PRNGKey(1), 4)
    R_b = jax.random.normal(kb[0], (B, 3, 3), jnp.float32)
    off_b = jax.random.normal(kb[1], (B, 3, 1), jnp.float32)
    as_b = jax.random.normal(kb[2], (B, SHAPE_DIM, 1), jnp.float32)
    ae_b = jax.random.normal(kb[3], (B, EXP_DIM, 1), jnp.float32)
    pts_b = jax.block_until_ready(
        fwd(R_b, off_b, as_b, ae_b, slab_f32, tile_n=128))
    assert pts_b.shape == (B, 3, N_VERT)
    for b in range(B):
        rb = reference_forward(R_b[b], off_b[b], as_b[b], ae_b[b], u, w)
        assert jnp.allclose(pts_b[b], rb, atol=1e-4, rtol=1e-4), "batched mismatch"

    print("KERNEL_OK")
</pallas_src>

<mosaic_0001>
module attributes {stable_mosaic.version = 11 : i64} {
  func.func @_bfm_kernel(%arg0: i32, %arg1: memref<3x154xf32, #tpu.memory_space<vmem>>, %arg2: memref<154x128xf32, #tpu.memory_space<vmem>>, %arg3: memref<3x128xf32, #tpu.memory_space<vmem>>) attributes {dimension_semantics = [#tpu.dimension_semantics<parallel>], iteration_bounds = array<i64: 2>, scalar_prefetch = 0 : i64, scratch_operands = 0 : i64, tpu.core_type = #tpu.core_type<tc>, window_params = [{pipeline_mode = #tpu.pipeline_mode<synchronous>, transform_indices = @transform_0, window_bounds = array<i64: 3, 154>}, {transform_indices = @transform_1, window_bounds = array<i64: 154, 128>}, {transform_indices = @transform_2, window_bounds = array<i64: 3, 128>}]} {
    %c0 = arith.constant 0 : index
    %c0_0 = arith.constant 0 : index
    %0 = vector.load %arg1[%c0, %c0_0] : memref<3x154xf32, #tpu.memory_space<vmem>>, vector<3x154xf32>
    %c0_1 = arith.constant 0 : index
    %c0_2 = arith.constant 0 : index
    %1 = vector.load %arg2[%c0_1, %c0_2] : memref<154x128xf32, #tpu.memory_space<vmem>>, vector<154x128xf32>
    %cst = arith.constant dense<0.000000e+00> : vector<3x128xf32>
    %2 = tpu.matmul %0, %1, %cst {dimension_numbers = #tpu.dot_dimension_numbers<[1], [0], [0], [1], [0, 0, 1, 1], [], []>} : vector<3x154xf32>, vector<154x128xf32>, vector<3x128xf32> -> vector<3x128xf32>
    %c0_3 = arith.constant 0 : index
    %c0_4 = arith.constant 0 : index
    %3 = vector.load %arg3[%c0_3, %c0_4] : memref<3x128xf32, #tpu.memory_space<vmem>>, vector<3x128xf32>
    tpu.vector_store %arg3[%c0_3, %c0_4], %2 {strides = array<i32>} : memref<3x128xf32, #tpu.memory_space<vmem>>, vector<3x128xf32>,
    return
  }
  func.func @transform_0(%arg0: i32) -> (i32, i32) {
    %c0_i32 = arith.constant 0 : i32
    %c0_i32_0 = arith.constant 0 : i32
    %c0_i32_1 = arith.constant 0 : i32
    return %c0_i32, %c0_i32_0 : i32, i32
  }
  func.func @transform_1(%arg0: i32) -> (i32, i32) {
    %c0_i32 = arith.constant 0 : i32
    %c0_i32_0 = arith.constant 0 : i32
    return %c0_i32, %arg0 : i32, i32
  }
  func.func @transform_2(%arg0: i32) -> (i32, i32) {
    %c0_i32 = arith.constant 0 : i32
    %c0_i32_0 = arith.constant 0 : i32
    return %c0_i32, %arg0 : i32, i32
  }
}

</mosaic_0001>

<bundles_post_ra>
// kernel: bfm_forward.1
= control target key start
LH: loop header
LB: loop body
LE: loop exit
PB: predicated region body
PF: predicated region fallthrough
CT: control target
= control target key end

     0   :  { %7 = vsyncpa [#allocation3], 0  ;;  %s720_s0 = inlined_call_operand.vmem [shape: f32[3,154], index: 0, kind: input, shape index: {}]   ;;  %s721_s1 = inlined_call_operand.hbm [shape: f32[154,256], index: 1, kind: input, shape index: {}]   ;;  %s722_s2 = inlined_call_operand.hbm [shape: f32[3,256], index: 2, kind: output, shape index: {}]  }
   0x1   :  { %9 = vsyncpa [#allocation3 + $0x1], 0 }
   0x2   :  { %10 = vsyncpa [#allocation4], 0 }
   0x3   :  { %12 = vsyncpa [#allocation4 + $0x1], 0  ;;  %s526_s9 = smov 0   ;;  %s528_s10 = smov 0  }
   0x4   :  { %s530_s11 = smov 0   ;;  %s532_s12 = smov 0  }
   0x5 LB: > { %s547_s13 = sadd.s32 4294967295, %s503_s12   ;;  %s346_s14 = sadd.s32 4294967294, %s503_s12   ;;  %s503_s12 = sphi %s532_s12, %s737_s12   ;;  %s499_s11 = sphi %s530_s11, %s736_s11   ;;  %s495_s10 = sphi %s528_s10, %s735_s10   ;;  %s491_s9 = sphi %s526_s9, %s734_s9  }
   0x6   : > { %s551_s15 = sadd.s32 1, %s503_s12   ;;  %s46_s16 = sadd.s32 1, %s499_s11 }
   0x7   : > { %s43_s17 = ssub.s32 %s503_s12, %s551_s15  ;;  %p53_p0 = scmp.ne.s32.totalorder %s499_s11, %s495_s10 }
   0x8   : > { %p44_p1 = scmp.eq.s32.totalorder %s43_s17, 0  ;;  %p54_p2 = scmp.eq.s32.totalorder %s503_s12, 0 }
   0x9   : > { %p59_p3 = scmp.ne.s32.totalorder %s495_s10, %s491_s9  ;;  %p60_p4 = scmp.eq.s32.totalorder %s547_s13, 0 }
   0xa   : > { %s563_s18 = scalar_select %p44_p1, %s499_s11, %s46_s16  }
   0xb   : > { %p55_p5 = por %p54_p2, %p53_p0  ;;  %p565_p6 = por %p60_p4, %p59_p3 }
   0xc   : > { %p83_p7 = scmp.eq.s32.totalorder %s547_s13, 1  ;;  %p89_p8 = scmp.eq.s32.totalorder %s346_s14, 1 }
   0xd   : > { %s725_s19 = scalar_select %p565_p6, 1, 0 }
   0xe   : > { %p372_p10 = scmp.lt.s32.totalorder %s503_s12, 2  ;;  %p572_p11 = por %p83_p7, %p53_p0 }
   0xf   : > { %p576_p12 = por %p89_p8, %p59_p3  ;;  %s112_s22 = sand.u32 1, %s499_s11  }
  0x10   : > { %s726_s20 = scalar_select %p572_p11, 1, 0 }
  0x11   : > { %s727_s21 = scalar_select %p576_p12, 1, 0 }
  0x12   : > { %s349_s23 = sshll.u32 %s503_s12, 7  ;;  %s358_s24 = smul.u32 160, %s112_s22 }
  0x13   : > { %s585_s27 = scalar_lea.hbm %s721_s1, %s349_s23  ;;  %p587_p13 = pnand %p372_p10, %p55_p5 }
  0x14   : > { %s116_s29 = scalar_lea.vmem [#allocation2], %s358_s24  ;;  %s594_s3 = scalar_lea.sflag [#allocation3], %s112_s22 }
  0x15   : > { %s122_s30 = sshll.u32 %s116_s29, 4  ;;  %s411_s4 = scalar_lea.hbm %s585_s27, 2560  ;;  %s591_s30 = int_to_ptr.vmem [resolvable:$true] %s122_s30 }
  0x16   : > { %p412_p1 = scmp.ne.s32.totalorder %s585_s27, %s411_s4  ;;  %p413_p2 = pneg %p587_p13 }
  0x17   : > { %s416_s7 = scalar_lea.hbm %s721_s1, 5120  ;;  %p417_p5 = scmp.lt.s32.totalorder %s585_s27, %s721_s1 }
  0x18   : > { %p414_p3 = pnand %p413_p2, %p412_p1  ;;  %p418_p7 = scmp.lt.s32.totalorder %s416_s7, %s411_s4 }
  0x1a   : > { %p415_p4 = pneg %p414_p3  ;;  %p419_p8 = por %p418_p7, %p417_p5 }
  0x1c   : > { %p420_p10 = pnand %p419_p8, %p415_p4 }
  0x1e   : > { %423 = shalt.err (!%p420_p10)
}
  0x1f   : > { %s424_s16 = scalar_lea.vmem %s591_s30, 2560  ;;  %s505_s17 = smov [#allocation2]  }
  0x20   : > { %p425_p9 = scmp.ne.s32.totalorder %s591_s30, %s424_s16  ;;  %s429_s22 = sshll.u32 %s505_s17, 4  ;;  %s430_s22 = int_to_ptr.vmem [resolvable:$false] %s429_s22 }
  0x21   : > { %s431_s23 = scalar_lea.vmem %s430_s22, 5120  ;;  %p432_p3 = scmp.lt.s32.totalorder %s591_s30, %s430_s22 }
  0x22   : > { %p427_p0 = pnand %p425_p9, %p413_p2  ;;  %p433_p12 = scmp.lt.s32.totalorder %s431_s23, %s424_s16 }
  0x24   : > { %p428_p1 = pneg %p427_p0  ;;  %p434_p11 = por %p433_p12, %p432_p3 }
  0x26   : > { %p435_p6 = pnand %p434_p11, %p428_p1 }
  0x28   : > { %438 = shalt.err (!%p435_p6)
}
  0x29   : > { %s506_s24 = smov 256   ;;  %s507_s25 = smov 128  }
  0x2a   : > { %s508_s26 = smov 8   ;;  %p130_p9 = scmp.lt.s32.totalorder %s503_s12, 3 }
  0x2b   : > { %367 = dma.hbm_to_vmem [thread:$0]  (!%p587_p13), %s585_s27, 2560, %s591_s30, %s594_s3, %s506_s24, %s507_s25, %s508_s26  }
  0x2c   : > { %p729_p0 = scmp.ge.s32.totalorder %s503_s12, 1 }
  0x2e   : > { %p131_p2 = pnand %p729_p0, %p130_p9 }
  0x2f   : > { %s619_s29 = sand.u32 (!%p131_p2), 1, %s495_s10   ;;  %p730_p6 = scmp.ne.s32.totalorder (!%p131_p2), %s725_s19, 0 }
  0x30   : > { %134 = sbr.rel (%p131_p2) target bundleno = 302 (0x12e), region = 28  ;;  %s137_s5 = scalar_lea.sflag (!%p131_p2), [#allocation3], %s619_s29 }
  0x31   : > { %s359_s4 = smul.u32 (!%p131_p2), 160, %s619_s29 }
  0x33   : > { %s623_s6 = scalar_lea.vmem (!%p131_p2), [#allocation2], %s359_s4 }
  0x35   : > { %482 = dma.done.wait (%p730_p6), %s137_s5, 2560  }
  0x36   : > { %484 = vsyncadd (%p730_p6), %s137_s5, 4294964736  ;;  %v509_v0 = vmov 0.0   ;;  %v177_v1 = vld [vmem:[%s623_s6 + $0x78] sm:$0xff]  ;;  %v176_v2 = vld [vmem:[%s623_s6 + $0x70] sm:$0xff]  ;;  %vm184_vm0 = vcmask 211968   ;;  %vm187_vm1 = vcmask 1041408  }
  0x37   : > { %191 = vmatprep.subr.mxu0 %v509_v0  ;;  %v175_v3 = vld [vmem:[%s623_s6 + $0x68] sm:$0xff]  ;;  %v174_v4 = vld [vmem:[%s623_s6 + $0x60] sm:$0xff]  ;;  %v173_v5 = vld [vmem:[%s623_s6 + $0x58] sm:$0xff]  ;;  %s351_s28 = sshll.u32 %s619_s29, 2  ;;  %s355_s7 = sshll.u32 %s547_s13, 6 }
  0x38   : > { %192 = vmatpush1.msra.mxu0 %v177_v1  ;;  %v161_v6 = vld [vmem:[%s720_s0] sm:$0x77]  ;;  %v172_v8 = vld [vmem:[%s623_s6 + $0x50] sm:$0xff]  ;;  %v171_v9 = vld [vmem:[%s623_s6 + $0x48] sm:$0xff]  ;;  %s160_s30 = scalar_lea.vmem [#allocation5], %s351_s28  ;;  %s679_s16 = scalar_lea.hbm %s722_s2, %s355_s7 }
  0x39   : > { %193 = vmatprep.subr.mxu0 %v509_v0  ;;  %v183_v7 = vcombine.high %v161_v6, %v161_v6  ;;  %v170_v10 = vld [vmem:[%s623_s6 + $0x40] sm:$0xff]  ;;  %v169_v11 = vld [vmem:[%s623_s6 + $0x38] sm:$0xff]  ;;  %v168_v12 = vld [vmem:[%s623_s6 + $0x30] sm:$0xff]  ;;  %s276_s3 = sshll.u32 %s160_s30, 4  ;;  %s263_s17 = scalar_lea.sflag [#allocation4], %s619_s29  ;;  %s674_s3 = int_to_ptr.vmem [resolvable:$true] %s276_s3 }
  0x3a   : > { %194 = vmatpush1.msra.mxu0 %v176_v2  ;;  %v167_v13 = vld [vmem:[%s623_s6 + $0x28] sm:$0xff]  ;;  %v166_v14 = vld [vmem:[%s623_s6 + $0x20] sm:$0xff]  ;;  %v165_v15 = vld [vmem:[%s623_s6 + $0x18] sm:$0xff]  ;;  %s439_s22 = scalar_lea.vmem %s674_s3, 64  ;;  %p731_p12 = scmp.ne.s32.totalorder %s726_s20, 0 }
  0x3b   : > { %195 = vmatprep.subr.mxu0 %v509_v0  ;;  %353 = vmatprep.mubr.msk.f32.mxu0 %vm184_vm0, %v183_v7  ;;  %v164_v16 = vld [vmem:[%s623_s6 + $0x10] sm:$0xff]  ;;  %v163_v17 = vld [vmem:[%s623_s6 + $0x8] sm:$0xff]  ;;  %v162_v18 = vld [vmem:[%s623_s6] sm:$0xff]  ;;  %p440_p11 = scmp.ne.s32.totalorder %s674_s3, %s439_s22  ;;  %s510_s13 = smov [#allocation5]  }
  0x3c   : > { %196 = vmatpush1.msra.mxu0 %v175_v3  ;;  %v181_v19 = vld [vmem:[%s623_s6 + $0x98] sm:$0x3]  ;;  %v180_v20 = vld [vmem:[%s623_s6 + $0x90] sm:$0xff]  ;;  %v179_v21 = vld [vmem:[%s623_s6 + $0x88] sm:$0xff]  ;;  %s443_s23 = sshll.u32 %s510_s13, 4  ;;  %s444_s23 = int_to_ptr.vmem [resolvable:$false] %s443_s23 }
  0x3d   : > { %197 = vmatprep.subr.mxu0 %v509_v0  ;;  %v178_v22 = vld [vmem:[%s623_s6 + $0x80] sm:$0xff]  ;;  %p441_p13 = pnand %p440_p11, %p731_p12  ;;  %s445_s24 = scalar_lea.vmem %s444_s23, 128 }
  0x3e   : > { %198 = vmatpush1.msra.mxu0 %v174_v4  ;;  %p446_p5 = scmp.lt.s32.totalorder %s674_s3, %s444_s23  ;;  %p447_p7 = scmp.lt.s32.totalorder %s445_s24, %s439_s22 }
  0x3f   : > { %199 = vmatprep.subr.mxu0 %v509_v0  ;;  %p442_p4 = pneg %p441_p13 }
  0x40   : > { %200 = vmatpush1.msra.mxu0 %v173_v5  ;;  %p448_p8 = por %p447_p7, %p446_p5 }
  0x41   : > { %201 = vmatprep.subr.mxu0 %v509_v0 }
  0x42   : > { %202 = vmatpush1.msra.mxu0 %v172_v8  ;;  %p449_p10 = pnand %p448_p8, %p442_p4 }
  0x43   : > { %203 = vmatprep.subr.mxu0 %v509_v0 }
  0x44   : > { %204 = vmatpush1.msra.mxu0 %v171_v9 }
  0x45   : > { %205 = vmatprep.subr.mxu0 %v509_v0 }
  0x46   : > { %206 = vmatpush1.msra.mxu0 %v170_v10 }
  0x47   : > { %207 = vmatprep.subr.mxu0 %v509_v0 }
  0x48   : > { %208 = vmatpush1.msra.mxu0 %v169_v11 }
  0x49   : > { %209 = vmatprep.subr.mxu0 %v509_v0 }
  0x4a   : > { %210 = vmatpush1.msra.mxu0 %v168_v12 }
  0x4b   : > { %211 = vmatprep.subr.mxu0 %v509_v0 }
  0x4c   : > { %212 = vmatpush1.msra.mxu0 %v167_v13 }
  0x4d   : > { %213 = vmatprep.subr.mxu0 %v509_v0 }
  0x4e   : > { %214 = vmatpush1.msra.mxu0 %v166_v14 }
  0x4f   : > { %215 = vmatprep.subr.mxu0 %v509_v0 }
  0x50   : > { %216 = vmatpush1.msra.mxu0 %v165_v15 }
  0x51   : > { %217 = vmatprep.subr.mxu0 %v509_v0 }
  0x52   : > { %218 = vmatpush1.msra.mxu0 %v164_v16 }
  0x53   : > { %219 = vmatprep.subr.mxu0 %v509_v0 }
  0x54   : > { %220 = vmatpush1.msra.mxu0 %v163_v17 }
  0x55   : > { %221 = vmatprep.subr.mxu0 %v509_v0 }
  0x56   : > { %222 = vmatpush1.msra.mxu0 %v162_v18 }
  0x57   : > { %247 = vmatprep.subr.mxu0 %v509_v0 }
  0x58   : > { %352 = vmatpush2.msk.msra.mxu0 %vm187_vm1, %v181_v19 }
  0x59   : > { %249 = vmatprep.subr.mxu0 %v509_v0 }
  0x5a   : > { %250 = vmatpush2.msra.mxu0 %v180_v20 }
  0x5b   : > { %251 = vmatprep.subr.mxu0 %v509_v0 }
  0x5c   : > { %252 = vmatpush2.msra.mxu0 %v179_v21 }
  0x5d   : > { %253 = vmatprep.subr.mxu0 %v509_v0 }
  0x5e   : > { %254 = vmatpush2.msra.mxu0 %v178_v22 }
  0x5f   : > { %256 = vmatmul.mubr.f32.vlgmr.msra.gmra.mxu0 %v161_v6 }
 0x11f   : > { %v257_v23 = vpop.f32.mrf.mxu0 }
 0x120   : > { %261 = vst [vmem:[%s160_s30] sm:$0x7] %v257_v23 }
 0x121   : > { %v259_v24 = vpop.f32.mrf.mxu0 }
 0x122   : > { %452 = shalt.err (!%p449_p10)
}
 0x123   : > { %s453_s25 = scalar_lea.hbm %s679_s16, 64  ;;  %s457_s4 = scalar_lea.hbm %s722_s2, 128 }
 0x124   : > { %p454_p1 = scmp.ne.s32.totalorder %s679_s16, %s453_s25  ;;  %p458_p0 = scmp.lt.s32.totalorder %s679_s16, %s722_s2 }
 0x125   : > { %p459_p2 = scmp.lt.s32.totalorder %s457_s4, %s453_s25 }
 0x126   : > { %p455_p3 = pnand %p454_p1, %p731_p12 }
 0x127   : > { %p460_p6 = por %p459_p2, %p458_p0 }
 0x128   : > { %p456_p9 = pneg %p455_p3 }
 0x12a   : > { %p461_p11 = pnand %p460_p6, %p456_p9 }
 0x12c   : > { %464 = shalt.err (!%p461_p11)
}
 0x12d   : > { %362 = dma.vmem_to_hbm [thread:$0]  (%p731_p12), %s674_s3, 64, %s679_s16, %s263_s17  }
 0x12e PF: > { %s288_s19 = sand.u32 1, %s491_s9   ;;  %p732_p13 = scmp.ne.s32.totalorder %s727_s21, 0 }
 0x12f   : > { %p733_p4 = scmp.ge.s32.totalorder %s503_s12, 2  ;;  %s289_s27 = scalar_lea.sflag [#allocation4], %s288_s19 }
 0x131   : > { %p369_p5 = pnand %p733_p4, %p732_p13 }
 0x133   : > { %p370_p7 = pneg %p369_p5 }
 0x135   : > { %486 = dma.done.wait (%p370_p7), %s289_s27, 64  }
 0x136   : > { %488 = vsyncadd (%p370_p7), %s289_s27, 4294967232  ;;  %p15_p8 = scmp.ge.s32.totalorder %s551_s15, 4   ;;  %s734_s9 = smov %s495_s10 }
 0x137   : > { %s735_s10 = smov %s499_s11  ;;  %s736_s11 = smov %s563_s18 }
 0x138   : > { %s737_s12 = smov %s551_s15  ;;  %17 = sbr.rel (!%p15_p8) target bundleno = 5 (0x5), region = 73 }
 0x13d   :  { %294 = vsyncpa [#allocation3], 1 }
 0x13e   :  { %296 = vsyncpa [#allocation3 + $0x1], 1 }
 0x13f   :  { %297 = vsyncpa [#allocation4], 1 }
 0x140   :  { %299 = vsyncpa [#allocation4 + $0x1], 1 }

</bundles_post_ra>
